<compile_context>
chip_gen: v7x
topology: tpu7x:2x2x1
jax: 0.10.0
libtpu: 0.0.40
codegen_flags: <defaults>
</compile_context>

<pallas_src>
import functools

import jax
import jax.numpy as jnp
from jax.experimental import pallas as pl
from jax.experimental.pallas import tpu as pltpu

BN_EPS = 1e-5
LANE = 128


def _round_up(x, m):
    return ((x + m - 1) // m) * m


def _pick_tile_m(tm, kc, oc_pad, budget_bytes=12 * 1024 * 1024):
    """Shrink the M tile until double-buffered in/out blocks fit a conservative VMEM budget
    (safe even on v7x's 64 MiB physical / 32 MiB default scoped VMEM)."""
    tm = max(128, _round_up(tm, 128))
    while tm > 128:
        per_step = (2 * tm * kc * 2          # patches tile, bf16, double-buffered
                    + 2 * kc * oc_pad * 2    # weight block, bf16
                    + 4 * tm * oc_pad * 4)   # y tiles (in/out), f32, double-buffered
        if per_step <= budget_bytes:
            break
        tm //= 2
    return tm


def _conv_stats_kernel(p_ref, w_ref, y_ref, sum_ref, sq_ref):
    """Pass 1: conv matmul tile + per-tile partial BN statistics."""
    acc = jnp.dot(p_ref[...], w_ref[...], preferred_element_type=jnp.float32)
    y_ref[...] = acc
    oc = acc.shape[-1]
    # Fold partial sums to (8, OC_pad): row r holds the sum over tile rows == r (mod 8).
    # Sublane-preserving reshape + leading-axis reduce -> plain VPU adds (no XLU pass);
    # the tiny cross-tile combine happens outside the kernel.
    sum_ref[...] = jnp.sum(acc.reshape(-1, 8, oc), axis=0)
    sq_ref[...] = jnp.sum(jnp.square(acc).reshape(-1, 8, oc), axis=0)


def _conv_only_kernel(p_ref, w_ref, o_ref, *, apply_relu):
    """bn=False path: conv matmul tile (+ optional ReLU)."""
    acc = jnp.dot(p_ref[...], w_ref[...], preferred_element_type=jnp.float32)
    if apply_relu:
        acc = jnp.maximum(acc, 0.0)
    o_ref[...] = acc.astype(o_ref.dtype)


def _bn_apply_kernel(y_ref, scale_ref, shift_ref, o_ref, *, apply_relu):
    """Pass 2: y * scale + shift (+ optional ReLU); scale/shift precomputed once."""
    y = y_ref[...] * scale_ref[...] + shift_ref[...]
    if apply_relu:
        y = jnp.maximum(y, 0.0)
    o_ref[...] = y.astype(o_ref.dtype)


def conv_forward(x_nchw, weight, gamma=None, beta=None, *, padding="same",
                 bn=True, relu=False, tm=512):
    """Forward pass of the `conv` module. x_nchw: (N, C, H, W), weight: (OC, C, KH, KW)."""
    # TODO(synk): stride/dilation/groups are fixed at the PyTorch defaults (1, 1, 1), and the
    # 'same' padding formula below matches the module only for odd kernel sizes.
    N, C, H, W = x_nchw.shape
    OC, Cw, KH, KW = weight.shape
    assert Cw == C

    if padding == "same":
        ph = KH // 2 + (KH % 2 - 1)
        pw = KW // 2 + (KW % 2 - 1)
    else:  # 'valid'
        ph = pw = 0

    x = jnp.transpose(x_nchw, (0, 2, 3, 1))                       # NCHW -> NHWC
    xp = jnp.pad(x, ((0, 0), (ph, ph), (pw, pw), (0, 0)))
    Ho = H + 2 * ph - KH + 1
    Wo = W + 2 * pw - KW + 1

    # TODO(synk): im2col is still materialized in HBM (KH*KW x input read traffic); next step
    # is kernel-side im2col via element-indexed BlockSpecs over the padded NHWC input.
    patches = jnp.concatenate(
        [xp[:, kh:kh + Ho, kw:kw + Wo, :] for kh in range(KH) for kw in range(KW)],
        axis=-1,
    ).reshape(N * Ho * Wo, KH * KW * C)

    # weight (OC, C, KH, KW) -> (KH, KW, C, OC) -> (KH*KW*C, OC) to match patch ordering.
    w2d = jnp.transpose(weight, (2, 3, 1, 0)).reshape(KH * KW * C, OC)

    M, Kc = patches.shape
    OC_pad = _round_up(OC, LANE)                       # lane-dense output blocks
    TM = _pick_tile_m(min(tm, _round_up(M, 128)), Kc, OC_pad)
    M_pad = _round_up(M, TM)
    num_tiles = M_pad // TM

    # Zero-pad M (padded rows contribute 0 to the BN sums and are sliced off) and OC.
    # bf16 matmul inputs; f32 accumulation in the kernel.
    patches = jnp.pad(patches, ((0, M_pad - M), (0, 0))).astype(jnp.bfloat16)
    w2d = jnp.pad(w2d, ((0, 0), (0, OC_pad - OC))).astype(jnp.bfloat16)

    parallel = pltpu.CompilerParams(dimension_semantics=("parallel",))
    out_dtype = x_nchw.dtype

    if not bn:
        out2d = pl.pallas_call(
            functools.partial(_conv_only_kernel, apply_relu=relu),
            out_shape=jax.ShapeDtypeStruct((M_pad, OC_pad), out_dtype),
            grid=(num_tiles,),
            in_specs=[
                pl.BlockSpec((TM, Kc), lambda i: (i, 0)),
                pl.BlockSpec((Kc, OC_pad), lambda i: (0, 0)),
            ],
            out_specs=pl.BlockSpec((TM, OC_pad), lambda i: (i, 0)),
            compiler_params=parallel,
        )(patches, w2d)
    else:
        assert gamma is not None and beta is not None

        # Pass 1: tiled conv matmul + per-tile partial statistics (M axis fully parallel).
        y2d, psum, psq = pl.pallas_call(
            _conv_stats_kernel,
            out_shape=(
                jax.ShapeDtypeStruct((M_pad, OC_pad), jnp.float32),
                jax.ShapeDtypeStruct((num_tiles * 8, OC_pad), jnp.float32),
                jax.ShapeDtypeStruct((num_tiles * 8, OC_pad), jnp.float32),
            ),
            grid=(num_tiles,),
            in_specs=[
                pl.BlockSpec((TM, Kc), lambda i: (i, 0)),
                pl.BlockSpec((Kc, OC_pad), lambda i: (0, 0)),
            ],
            out_specs=(
                pl.BlockSpec((TM, OC_pad), lambda i: (i, 0)),
                pl.BlockSpec((8, OC_pad), lambda i: (i, 0)),
                pl.BlockSpec((8, OC_pad), lambda i: (i, 0)),
            ),
            compiler_params=parallel,
        )(patches, w2d)

        # Tiny per-channel combine (plain-JAX glue, O(num_tiles*OC)): mean/var -> scale/shift,
        # computed once so the per-tile pass-2 body is a single fused multiply-add.
        count = jnp.float32(M)                         # true row count; padded rows added 0
        mean = jnp.sum(psum, axis=0) / count
        var = jnp.sum(psq, axis=0) / count - jnp.square(mean)     # biased (training) variance
        gamma_pad = jnp.pad(gamma.astype(jnp.float32), (0, OC_pad - OC), constant_values=1.0)
        beta_pad = jnp.pad(beta.astype(jnp.float32), (0, OC_pad - OC))
        scale = gamma_pad * jax.lax.rsqrt(var + BN_EPS)
        shift = beta_pad - mean * scale

        # Pass 2: normalize (+ optional ReLU), tiled over M, fully parallel.
        out2d = pl.pallas_call(
            functools.partial(_bn_apply_kernel, apply_relu=relu),
            out_shape=jax.ShapeDtypeStruct((M_pad, OC_pad), out_dtype),
            grid=(num_tiles,),
            in_specs=[
                pl.BlockSpec((TM, OC_pad), lambda i: (i, 0)),
                pl.BlockSpec((1, OC_pad), lambda i: (0, 0)),
                pl.BlockSpec((1, OC_pad), lambda i: (0, 0)),
            ],
            out_specs=pl.BlockSpec((TM, OC_pad), lambda i: (i, 0)),
            compiler_params=parallel,
        )(y2d, scale.reshape(1, OC_pad), shift.reshape(1, OC_pad))

    out = out2d[:M, :OC].reshape(N, Ho, Wo, OC)
    return jnp.transpose(out, (0, 3, 1, 2))                       # back to NCHW


def _reference(x, weight, gamma, beta, *, bn=True, relu=False):
    """Plain-JAX reference for correctness checking."""
    KH, KW = weight.shape[2], weight.shape[3]
    ph = KH // 2 + (KH % 2 - 1)
    pw = KW // 2 + (KW % 2 - 1)
    y = jax.lax.conv_general_dilated(
        x, weight, window_strides=(1, 1), padding=((ph, ph), (pw, pw)),
        dimension_numbers=("NCHW", "OIHW", "NCHW"))
    if bn:
        mean = jnp.mean(y, axis=(0, 2, 3), keepdims=True)
        var = jnp.mean(jnp.square(y - mean), axis=(0, 2, 3), keepdims=True)
        y = (y - mean) * (gamma.reshape(1, -1, 1, 1) * jax.lax.rsqrt(var + BN_EPS)) \
            + beta.reshape(1, -1, 1, 1)
    if relu:
        y = jnp.maximum(y, 0.0)
    return y


if __name__ == "__main__":
    key = jax.random.PRNGKey(0)
    kx, kw = jax.random.split(key)

    # Module config: conv(in_channels=4, out_channels=8, kernel_size=3) with defaults
    # (stride=1, dilation=1, groups=1, padding='same', bias=False, bn=True, relu=False).
    N, C, H, W = 2, 4, 16, 16
    OC, K = 8, 3

    x = jax.random.normal(kx, (N, C, H, W), jnp.float32)

    # kaiming_normal_ (fan_in mode, relu gain): std = sqrt(2 / (C*K*K))
    std = (2.0 / (C * K * K)) ** 0.5
    weight = jax.random.normal(kw, (OC, C, K, K), jnp.float32) * std

    # BatchNorm2d default parameter init: gamma=1, beta=0.
    gamma = jnp.ones((OC,), jnp.float32)
    beta = jnp.zeros((OC,), jnp.float32)

    # The kernel does the matmul on bf16-rounded inputs (f32 accumulation); compare against
    # an f32 reference fed the identical bf16-rounded values so the check stays tight.
    x_q = x.astype(jnp.bfloat16).astype(jnp.float32)
    w_q = weight.astype(jnp.bfloat16).astype(jnp.float32)

    configs = [
        dict(bn=True, relu=False),   # module defaults
        dict(bn=True, relu=True),
        dict(bn=False, relu=False),
    ]
    for cfg in configs:
        # tm=128 -> 4 M-tiles at this toy size, exercising the tiled two-pass BN path.
        out = conv_forward(x, weight, gamma, beta, tm=128, **cfg)
        out = jax.block_until_ready(out)
        ref = _reference(x_q, w_q, gamma, beta, **cfg)
        assert out.shape == (N, OC, H, W), (cfg, out.shape)
        assert jnp.allclose(out, ref, atol=2e-4, rtol=2e-4), cfg

    print("KERNEL_OK")
</pallas_src>

<mosaic_0001>
module attributes {stable_mosaic.version = 11 : i64} {
  func.func @_conv_stats_kernel(%arg0: i32, %arg1: memref<128x36xbf16, #tpu.memory_space<vmem>>, %arg2: memref<36x128xbf16, #tpu.memory_space<vmem>>, %arg3: memref<128x128xf32, #tpu.memory_space<vmem>>, %arg4: memref<8x128xf32, #tpu.memory_space<vmem>>, %arg5: memref<8x128xf32, #tpu.memory_space<vmem>>) attributes {dimension_semantics = [#tpu.dimension_semantics<parallel>], iteration_bounds = array<i64: 4>, scalar_prefetch = 0 : i64, scratch_operands = 0 : i64, tpu.core_type = #tpu.core_type<tc>, window_params = [{transform_indices = @transform_0, window_bounds = array<i64: 128, 36>}, {pipeline_mode = #tpu.pipeline_mode<synchronous>, transform_indices = @transform_1, window_bounds = array<i64: 36, 128>}, {transform_indices = @transform_2, window_bounds = array<i64: 128, 128>}, {transform_indices = @transform_3, window_bounds = array<i64: 8, 128>}, {transform_indices = @transform_4, window_bounds = array<i64: 8, 128>}]} {
    %c0 = arith.constant 0 : index
    %c0_0 = arith.constant 0 : index
    %0 = vector.load %arg1[%c0, %c0_0] : memref<128x36xbf16, #tpu.memory_space<vmem>>, vector<128x36xbf16>
    %c0_1 = arith.constant 0 : index
    %c0_2 = arith.constant 0 : index
    %1 = vector.load %arg2[%c0_1, %c0_2] : memref<36x128xbf16, #tpu.memory_space<vmem>>, vector<36x128xbf16>
    %cst = arith.constant dense<0.000000e+00> : vector<128x128xf32>
    %2 = tpu.matmul %0, %1, %cst {dimension_numbers = #tpu.dot_dimension_numbers<[1], [0], [0], [1], [0, 0, 1, 1], [], []>} : vector<128x36xbf16>, vector<36x128xbf16>, vector<128x128xf32> -> vector<128x128xf32>
    %c0_3 = arith.constant 0 : index
    %c0_4 = arith.constant 0 : index
    %3 = vector.load %arg3[%c0_3, %c0_4] : memref<128x128xf32, #tpu.memory_space<vmem>>, vector<128x128xf32>
    tpu.vector_store %arg3[%c0_3, %c0_4], %2 {strides = array<i32>} : memref<128x128xf32, #tpu.memory_space<vmem>>, vector<128x128xf32>,
    %4 = vector.shape_cast %2 : vector<128x128xf32> to vector<16x8x128xf32>
    %cst_5 = arith.constant dense<0.000000e+00> : vector<8x128xf32>
    %5 = vector.multi_reduction <add>, %4, %cst_5 [0] : vector<16x8x128xf32> to vector<8x128xf32>
    %c0_6 = arith.constant 0 : index
    %c0_7 = arith.constant 0 : index
    %6 = vector.load %arg4[%c0_6, %c0_7] : memref<8x128xf32, #tpu.memory_space<vmem>>, vector<8x128xf32>
    tpu.vector_store %arg4[%c0_6, %c0_7], %5 {strides = array<i32>} : memref<8x128xf32, #tpu.memory_space<vmem>>, vector<8x128xf32>,
    %7 = arith.mulf %2, %2 : vector<128x128xf32>
    %8 = vector.shape_cast %7 : vector<128x128xf32> to vector<16x8x128xf32>
    %cst_8 = arith.constant dense<0.000000e+00> : vector<8x128xf32>
    %9 = vector.multi_reduction <add>, %8, %cst_8 [0] : vector<16x8x128xf32> to vector<8x128xf32>
    %c0_9 = arith.constant 0 : index
    %c0_10 = arith.constant 0 : index
    %10 = vector.load %arg5[%c0_9, %c0_10] : memref<8x128xf32, #tpu.memory_space<vmem>>, vector<8x128xf32>
    tpu.vector_store %arg5[%c0_9, %c0_10], %9 {strides = array<i32>} : memref<8x128xf32, #tpu.memory_space<vmem>>, vector<8x128xf32>,
    return
  }
  func.func @transform_0(%arg0: i32) -> (i32, i32) {
    %c0_i32 = arith.constant 0 : i32
    %c0_i32_0 = arith.constant 0 : i32
    return %arg0, %c0_i32 : i32, i32
  }
  func.func @transform_1(%arg0: i32) -> (i32, i32) {
    %c0_i32 = arith.constant 0 : i32
    %c0_i32_0 = arith.constant 0 : i32
    %c0_i32_1 = arith.constant 0 : i32
    return %c0_i32, %c0_i32_0 : i32, i32
  }
  func.func @transform_2(%arg0: i32) -> (i32, i32) {
    %c0_i32 = arith.constant 0 : i32
    %c0_i32_0 = arith.constant 0 : i32
    return %arg0, %c0_i32 : i32, i32
  }
  func.func @transform_3(%arg0: i32) -> (i32, i32) {
    %c0_i32 = arith.constant 0 : i32
    %c0_i32_0 = arith.constant 0 : i32
    return %arg0, %c0_i32 : i32, i32
  }
  func.func @transform_4(%arg0: i32) -> (i32, i32) {
    %c0_i32 = arith.constant 0 : i32
    %c0_i32_0 = arith.constant 0 : i32
    return %arg0, %c0_i32 : i32, i32
  }
}

</mosaic_0001>

<bundles_post_ra>
// kernel: tpu_custom_call.1
= control target key start
LH: loop header
LB: loop body
LE: loop exit
PB: predicated region body
PF: predicated region fallthrough
CT: control target
= control target key end

     0   :  { %10 = vsyncpa [#allocation3], 0  ;;  %s1206_s0 = inlined_call_operand.vmem [shape: bf16[512,36], index: 0, kind: input, shape index: {}]   ;;  %s1207_s1 = inlined_call_operand.vmem [shape: bf16[36,128], index: 1, kind: input, shape index: {}]   ;;  %s1208_s2 = inlined_call_operand.hbm [shape: f32[512,128], index: 2, kind: output, shape index: {0}]   ;;  %s1209_s3 = inlined_call_operand.hbm [shape: f32[32,128], index: 3, kind: output, shape index: {1}]   ;;  %s1210_s4 = inlined_call_operand.hbm [shape: f32[32,128], index: 4, kind: output, shape index: {2}]  }
   0x1   :  { %12 = vsyncpa [#allocation3 + $0x1], 0 }
   0x2   :  { %13 = vsyncpa [#allocation5], 0 }
   0x3   :  { %15 = vsyncpa [#allocation5 + $0x1], 0  ;;  %s952_s15 = smov 0   ;;  %s954_s16 = smov 0  }
   0x4   :  { %s956_s17 = smov 0   ;;  %s958_s18 = smov 0  }
   0x5 LB: > { %s973_s19 = sadd.s32 4294967295, %s920_s18   ;;  %s657_s20 = sadd.s32 4294967294, %s920_s18   ;;  %s920_s18 = sphi %s958_s18, %s1216_s18   ;;  %s916_s17 = sphi %s956_s17, %s1215_s17   ;;  %s912_s16 = sphi %s954_s16, %s1214_s16   ;;  %s908_s15 = sphi %s952_s15, %s1213_s15  }
   0x6   : > { %s977_s21 = sadd.s32 1, %s920_s18   ;;  %s75_s22 = sadd.s32 1, %s916_s17 }
   0x7   : > { %s72_s23 = ssub.s32 %s920_s18, %s977_s21  ;;  %p85_p0 = scmp.ne.s32.totalorder %s916_s17, %s912_s16 }
   0x8   : > { %p73_p1 = scmp.eq.s32.totalorder %s72_s23, 0  ;;  %p86_p2 = scmp.eq.s32.totalorder %s973_s19, 3 }
   0x9   : > { %p91_p3 = scmp.ne.s32.totalorder %s912_s16, %s908_s15  ;;  %p92_p4 = scmp.eq.s32.totalorder %s657_s20, 3 }
   0xa   : > { %s990_s24 = scalar_select %p73_p1, %s916_s17, %s75_s22  }
   0xb   : > { %p992_p5 = por %p86_p2, %p85_p0  ;;  %p996_p6 = por %p92_p4, %p91_p3 }
   0xc   : > { %p660_p7 = scmp.ge.s32.totalorder %s920_s18, 1  ;;  %p174_p8 = scmp.lt.s32.totalorder %s920_s18, 5 }
   0xe   : > { %p175_p9 = pnand %p660_p7, %p174_p8 }
   0xf   : > { %v787_v0 = vld [vmem:[%s1207_s1] sm:$0xff] (!%p175_p9)   ;;  %v788_v1 = vld [vmem:[%s1207_s1 + $0x8] sm:$0xff] (!%p175_p9)   ;;  %s664_s5 = sshll.u32 (!%p175_p9), %s973_s19, 4  ;;  %v789_v2 = vld [vmem:[%s1207_s1 + $0x10] ss:$0 sps:$4 sm:$0x33] (!%p175_p9)  }
  0x10   : > { %178 = sbr.rel (%p175_p9) target bundleno = 320 (0x140), region = 28  ;;  %706 = vmatprep.subr.bf16.mxu0 (!%p175_p9), %v787_v0  ;;  %p211_p10 = scmp.lt.s32.totalorder (!%p175_p9), %s664_s5, 63  ;;  %728 = vmatprep.subr.bf16.mxu1 (!%p175_p9), %v787_v0  ;;  %vm319_vm0 = vcmask (!%p175_p9), 1041408   ;;  %vm294_vm1 = vcmask (!%p175_p9), 293888  }
  0x11   : > { %707 = vmatpush3.bf16.msra.mxu0 (!%p175_p9), %v787_v0  ;;  %731 = vmatpush3.bf16.msra.mxu1 (!%p175_p9), %v787_v0  ;;  %v321_v3 = vsel (!%p175_p9), %vm319_vm0, %v789_v2, 0  ;;  %s1024_s12 = sand.u32 (!%p175_p9), 1, %s912_s16   ;;  %s694_s22 = sshll.u32 (!%p175_p9), %s973_s19, 11 }
  0x12   : > { %708 = vmatprep.subr.bf16.mxu0 (!%p175_p9), %v788_v1  ;;  %729 = vmatprep.subr.bf16.mxu1 (!%p175_p9), %v788_v1  ;;  %s661_s13 = sshll.u32 (!%p175_p9), %s1024_s12, 7  ;;  %s1062_s29 = scalar_lea.hbm (!%p175_p9), %s1208_s2, %s694_s22 }
  0x13   : > { %s1027_s14 = scalar_lea.vmem (!%p175_p9), [#allocation2], %s661_s13  ;;  %s485_s30 = scalar_lea.sflag (!%p175_p9), [#allocation3], %s1024_s12 }
  0x14   : > { %s508_s23 = sshll.u32 (!%p175_p9), %s1027_s14, 4  ;;  %s922_s6 = smov (!%p175_p9), [#allocation2]   ;;  %s1064_s23 = int_to_ptr.vmem [resolvable:$true] %s508_s23 }
  0x15   : > { %709 = vmatpush3.bf16.msra.mxu0 (!%p175_p9), %v788_v1  ;;  %732 = vmatpush3.bf16.msra.mxu1 (!%p175_p9), %v788_v1  ;;  %s802_s7 = sshll.u32 (!%p175_p9), %s922_s6, 4  ;;  %s803_s7 = int_to_ptr.vmem [resolvable:$false] %s802_s7 }
  0x16   : > { %734 = vmatprep.subr.msk.bf16.mxu0 (!%p175_p9), %vm319_vm0, %v789_v2  ;;  %735 = vmatprep.subr.msk.bf16.mxu1 (!%p175_p9), %vm319_vm0, %v789_v2  ;;  %p805_p0 = scmp.lt.s32.totalorder (!%p175_p9), %s1064_s23, %s803_s7 }
  0x17   : > { %s1218_s5 = smov (!%p211_p10, %s664_s5), 63 }
  0x18   : > { %s665_s8 = sshll.u32 %s1218_s5, 2  ;;  %s798_s5 = scalar_lea.vmem %s1064_s23, 2048 }
  0x19   : > { %s214_s11 = scalar_lea.vmem %s1206_s0, %s665_s8  ;;  %711 = vmatpush3.bf16.msra.mxu0 %v321_v3  ;;  %733 = vmatpush3.bf16.msra.mxu1 %v321_v3  ;;  %p799_p11 = scmp.ne.s32.totalorder %s1064_s23, %s798_s5 }
  0x1a   : > { %v790_v4 = vld [vmem:[%s214_s11] sm:$0xff]   ;;  %v791_v5 = vld [vmem:[%s214_s11 + $0x8] sm:$0xff]   ;;  %v792_v6 = vld [vmem:[%s214_s11 + $0x10] sm:$0xff]   ;;  %s804_s8 = scalar_lea.vmem %s803_s7, 4096 }
  0x1b   : > { %712 = vmatprep.mubr.msk.bf16.mxu0 %vm294_vm1, %v790_v4  ;;  %v794_v7 = vld [vmem:[%s214_s11 + $0x20] sm:$0xff]   ;;  %v795_v8 = vld [vmem:[%s214_s11 + $0x28] sm:$0xff]   ;;  %v796_v9 = vld [vmem:[%s214_s11 + $0x30] sm:$0xff]   ;;  %p800_p12 = pnand %p799_p11, %p992_p5  ;;  %p806_p1 = scmp.lt.s32.totalorder %s804_s8, %s798_s5 }
  0x1c   : > { %713 = vmatmul.mubr.msk.bf16.vlgmr.msra.gmra.mrb[0].mxu0 %vm294_vm1, %v791_v5  ;;  %720 = vmatprep.mubr.msk.bf16.mxu1 %vm294_vm1, %v794_v7  ;;  %v793_v10 = vld [vmem:[%s214_s11 + $0x18] sm:$0xff]  }
  0x1d   : > { %716 = vmatprep.mubr.msk.bf16.mxu0 %vm294_vm1, %v792_v6  ;;  %721 = vmatmul.mubr.msk.bf16.vlgmr.msra.gmra.mrb[0].mxu1 %vm294_vm1, %v795_v8  ;;  %v797_v11 = vld [vmem:[%s214_s11 + $0x38] sm:$0xff]   ;;  %p801_p13 = pneg %p800_p12  ;;  %p807_p2 = por %p806_p1, %p805_p0 }
  0x1e   : > { %724 = vmatprep.mubr.msk.bf16.mxu1 %vm294_vm1, %v796_v9 }
  0x1f   : > { %p808_p3 = pnand %p807_p2, %p801_p13 }
  0x24   : > { %717 = vmatmul.mubr.msk.bf16.gmra.mrb[4].mxu0 %vm294_vm1, %v793_v10 }
  0x25   : > { %725 = vmatmul.mubr.msk.bf16.gmra.mrb[4].mxu1 %vm294_vm1, %v797_v11 }
  0xef   : > { %v714_v12 = vpop.f32.mrb[0].mxu0 }
  0xf0   : > { %422 = vst [vmem:[%s1027_s14 + $0x10] sm:$0xff] %v714_v12  ;;  %v357_v13 = vpop.f32.mrb[1].mxu0  ;;  %v1030_v14 = vpop.f32.mrb[0].mxu1  ;;  %v454_v23 = vmul.f32 %v714_v12, %v714_v12 }
  0xf1   : > { %420 = vst [vmem:[%s1027_s14] sm:$0xff] %v357_v13  ;;  %v715_v15 = vpop.f32.mrb[2].mxu0  ;;  %430 = vst [vmem:[%s1027_s14 + $0x50] sm:$0xff] %v1030_v14  ;;  %v1035_v16 = vpop.f32.mrb[1].mxu1  ;;  %v452_v19 = vmul.f32 %v357_v13, %v357_v13 }
  0xf2   : > { %423 = vst [vmem:[%s1027_s14 + $0x18] sm:$0xff] %v715_v15  ;;  %v360_v17 = vpop.f32.mrb[3].mxu0  ;;  %428 = vst [vmem:[%s1027_s14 + $0x40] sm:$0xff] %v1035_v16  ;;  %v1040_v18 = vpop.f32.mrb[2].mxu1  ;;  %v455_v26 = vmul.f32 %v715_v15, %v715_v15 }
  0xf3   : > { %421 = vst [vmem:[%s1027_s14 + $0x8] sm:$0xff] %v360_v17  ;;  %v436_v20 = vadd.f32 %v360_v17, %v357_v13  ;;  %v453_v21 = vmul.f32 %v360_v17, %v360_v17  ;;  %431 = vst [vmem:[%s1027_s14 + $0x58] sm:$0xff] %v1040_v18  ;;  %v1045_v22 = vpop.f32.mrb[3].mxu1 }
  0xf4   : > { %429 = vst [vmem:[%s1027_s14 + $0x48] sm:$0xff] %v1045_v22 }
  0xf5   : > { %v437_v24 = vadd.f32 %v714_v12, %v436_v20  ;;  %v468_v25 = vadd.f32 %v453_v21, %v452_v19 }
  0xf7   : > { %v469_v27 = vadd.f32 %v468_v25, %v454_v23  ;;  %v718_v28 = vpop.f32.mrb[4].mxu0  ;;  %v438_v29 = vadd.f32 %v715_v15, %v437_v24 }
  0xf8   : > { %426 = vst [vmem:[%s1027_s14 + $0x30] sm:$0xff] %v718_v28  ;;  %v373_v30 = vpop.f32.mrb[5].mxu0  ;;  %v1052_v31 = vpop.f32.mrb[4].mxu1  ;;  %v458_v43 = vmul.f32 %v718_v28, %v718_v28 }
  0xf9   : > { %424 = vst [vmem:[%s1027_s14 + $0x20] sm:$0xff] %v373_v30  ;;  %v439_v32 = vadd.f32 %v438_v29, %v373_v30  ;;  %v456_v33 = vmul.f32 %v373_v30, %v373_v30  ;;  %v470_v34 = vadd.f32 %v469_v27, %v455_v26  ;;  %v719_v35 = vpop.f32.mrb[6].mxu0  ;;  %434 = vst [vmem:[%s1027_s14 + $0x70] sm:$0xff] %v1052_v31  ;;  %v1057_v36 = vpop.f32.mrb[5].mxu1 }
  0xfa   : > { %427 = vst [vmem:[%s1027_s14 + $0x38] sm:$0xff] %v719_v35  ;;  %v376_v37 = vpop.f32.mrb[7].mxu0  ;;  %432 = vst [vmem:[%s1027_s14 + $0x60] sm:$0xff] %v1057_v36  ;;  %v1069_v38 = vpop.f32.mrb[6].mxu1 }
  0xfb   : > { %v471_v39 = vadd.f32 %v470_v34, %v456_v33  ;;  %425 = vst [vmem:[%s1027_s14 + $0x28] sm:$0xff] %v376_v37  ;;  %v440_v40 = vadd.f32 %v439_v32, %v376_v37  ;;  %v457_v41 = vmul.f32 %v376_v37, %v376_v37  ;;  %435 = vst [vmem:[%s1027_s14 + $0x78] sm:$0xff] %v1069_v38  ;;  %v408_v42 = vpop.f32.mrb[7].mxu1 }
  0xfc   : > { %433 = vst [vmem:[%s1027_s14 + $0x68] sm:$0xff] %v408_v42 }
  0xfd   : > { %v441_v44 = vadd.f32 %v718_v28, %v440_v40  ;;  %v472_v45 = vadd.f32 %v471_v39, %v457_v41 }
  0xfe   : > { %811 = shalt.err (!%p808_p3)
}
  0xff   : > { %s812_s9 = scalar_lea.hbm %s1062_s29, 2048  ;;  %s816_s13 = scalar_lea.hbm %s1208_s2, 8192 }
 0x100   : > { %p813_p4 = scmp.ne.s32.totalorder %s1062_s29, %s812_s9  ;;  %p817_p9 = scmp.lt.u32.totalorder %s1062_s29, %s1208_s2 }
 0x101   : > { %p818_p10 = scmp.lt.u32.totalorder %s816_s13, %s812_s9  ;;  %p820_p12 = scmp.lt.u32.totalorder %s812_s9, %s1062_s29 }
 0x102   : > { %p814_p7 = pnand %p813_p4, %p992_p5 }
 0x103   : > { %p819_p11 = por %p818_p10, %p817_p9 }
 0x104   : > { %p815_p8 = pneg %p814_p7 }
 0x105   : > { %p821_p13 = por %p820_p12, %p819_p11 }
 0x107   : > { %p822_p0 = pnand %p821_p13, %p815_p8 }
 0x109   : > { %825 = shalt.err (!%p822_p0)
}
 0x10a   : > { %s923_s27 = smov 128   ;;  %s924_s28 = smov 8   ;;  %v459_v46 = vmul.f32 %v719_v35, %v719_v35  ;;  %v473_v47 = vadd.f32 %v472_v45, %v458_v43  ;;  %v442_v48 = vadd.f32 %v719_v35, %v441_v44  ;;  %v460_v49 = vmul.f32 %v1035_v16, %v1035_v16 }
 0x10b   : > { %736 = dma.vmem_to_hbm [thread:$0]  (%p992_p5), %s1064_s23, 2048, %s1062_s29, %s485_s30, %s923_s27, %s923_s27, %s924_s28   ;;  %v461_v54 = vmul.f32 %v1045_v22, %v1045_v22  ;;  %v462_v55 = vmul.f32 %v1030_v14, %v1030_v14  ;;  %v463_v58 = vmul.f32 %v1040_v18, %v1040_v18  ;;  %v464_v61 = vmul.f32 %v1057_v36, %v1057_v36 }
 0x10c   : > { %v443_v50 = vadd.f32 %v442_v48, %v1035_v16  ;;  %v474_v51 = vadd.f32 %v473_v47, %v459_v46  ;;  %s662_s23 = sshll.u32 %s1024_s12, 3  ;;  %v465_v2 = vmul.f32 %v408_v42, %v408_v42  ;;  %s489_s29 = sand.u32 1, %s973_s19   ;;  %v466_v3 = vmul.f32 %v1052_v31, %v1052_v31 }
 0x10d   : > { %s690_s30 = sshll.u32 %s973_s19, 7  ;;  %s202_s5 = scalar_lea.vmem [#allocation4], %s662_s23  ;;  %v467_v6 = vmul.f32 %v1069_v38, %v1069_v38 }
 0x10e   : > { %v475_v52 = vadd.f32 %v474_v51, %v460_v49  ;;  %v444_v53 = vadd.f32 %v443_v50, %v1045_v22  ;;  %s524_s6 = sshll.u32 %s202_s5, 4  ;;  %s1120_s12 = scalar_lea.vmem [#allocation6], %s662_s23  ;;  %s1131_s6 = int_to_ptr.vmem [resolvable:$true] %s524_s6 }
 0x10f   : > { %s537_s7 = sshll.u32 %s1120_s12, 4  ;;  %s1129_s9 = scalar_lea.hbm %s1209_s3, %s690_s30  ;;  %s1138_s7 = int_to_ptr.vmem [resolvable:$true] %s537_s7 }
 0x110   : > { %v445_v56 = vadd.f32 %v1030_v14, %v444_v53  ;;  %v476_v57 = vadd.f32 %v475_v52, %v461_v54  ;;  %s1136_s13 = scalar_lea.hbm %s1210_s4, %s690_s30  ;;  %s1140_s14 = scalar_lea.sflag [#allocation5], %s489_s29 }
 0x111   : > { %s826_s22 = scalar_lea.vmem %s1131_s6, 128  ;;  %s925_s27 = smov [#allocation4]  }
 0x112   : > { %v477_v59 = vadd.f32 %v476_v57, %v462_v55  ;;  %v446_v60 = vadd.f32 %v1040_v18, %v445_v56  ;;  %p827_p1 = scmp.ne.s32.totalorder %s1131_s6, %s826_s22  ;;  %s830_s28 = sshll.u32 %s925_s27, 4  ;;  %s831_s28 = int_to_ptr.vmem [resolvable:$false] %s830_s28 }
 0x113   : > { %s832_s23 = scalar_lea.vmem %s831_s28, 256  ;;  %p833_p4 = scmp.lt.s32.totalorder %s1131_s6, %s831_s28 }
 0x114   : > { %v447_v62 = vadd.f32 %v446_v60, %v1057_v36  ;;  %v478_v63 = vadd.f32 %v477_v59, %v463_v58  ;;  %p828_p2 = pnand %p827_p1, %p992_p5  ;;  %p834_p7 = scmp.lt.s32.totalorder %s832_s23, %s826_s22 }
 0x116   : > { %v479_v0 = vadd.f32 %v478_v63, %v464_v61  ;;  %v448_v1 = vadd.f32 %v447_v62, %v408_v42  ;;  %p829_p3 = pneg %p828_p2  ;;  %p835_p8 = por %p834_p7, %p833_p4 }
 0x118   : > { %v449_v4 = vadd.f32 %v1052_v31, %v448_v1  ;;  %v480_v5 = vadd.f32 %v479_v0, %v465_v2  ;;  %p836_p9 = pnand %p835_p8, %p829_p3 }
 0x11a   : > { %v481_v7 = vadd.f32 %v480_v5, %v466_v3  ;;  %v450_v8 = vadd.f32 %v1069_v38, %v449_v4 }
 0x11c   : > { %451 = vst [vmem:[%s202_s5] sm:$0xff] %v450_v8  ;;  %v482_v9 = vadd.f32 %v481_v7, %v467_v6 }
 0x11d   : > { %839 = shalt.err (!%p836_p9)
}
 0x11e   : > { %s840_s29 = scalar_lea.hbm %s1129_s9, 128  ;;  %s844_s19 = scalar_lea.hbm %s1209_s3, 512 }
 0x11f   : > { %p841_p10 = scmp.ne.s32.totalorder %s1129_s9, %s840_s29  ;;  %p845_p13 = scmp.lt.u32.totalorder %s1129_s9, %s1209_s3 }
 0x120   : > { %p846_p0 = scmp.lt.u32.totalorder %s844_s19, %s840_s29  ;;  %p848_p2 = scmp.lt.u32.totalorder %s840_s29, %s1129_s9 }
 0x121   : > { %p842_p11 = pnand %p841_p10, %p992_p5 }
 0x122   : > { %p847_p1 = por %p846_p0, %p845_p13 }
 0x123   : > { %p843_p12 = pneg %p842_p11 }
 0x124   : > { %p849_p3 = por %p848_p2, %p847_p1 }
 0x126   : > { %p850_p4 = pnand %p849_p3, %p843_p12 }
 0x128   : > { %853 = shalt.err (!%p850_p4)
}
 0x129   : > { %737 = dma.vmem_to_hbm [thread:$0]  (%p992_p5), %s1131_s6, 128, %s1129_s9, %s1140_s14   ;;  %483 = vst [vmem:[%s1120_s12] sm:$0xff] %v482_v9 }
 0x12a   : > { %s854_s11 = scalar_lea.vmem %s1138_s7, 128  ;;  %s926_s22 = smov [#allocation6]  }
 0x12b   : > { %p855_p7 = scmp.ne.s32.totalorder %s1138_s7, %s854_s11  ;;  %s858_s27 = sshll.u32 %s926_s22, 4  ;;  %s859_s27 = int_to_ptr.vmem [resolvable:$false] %s858_s27 }
 0x12c   : > { %s860_s28 = scalar_lea.vmem %s859_s27, 256  ;;  %p861_p10 = scmp.lt.s32.totalorder %s1138_s7, %s859_s27 }
 0x12d   : > { %p856_p8 = pnand %p855_p7, %p992_p5  ;;  %p862_p11 = scmp.lt.s32.totalorder %s860_s28, %s854_s11 }
 0x12f   : > { %p857_p9 = pneg %p856_p8  ;;  %p863_p12 = por %p862_p11, %p861_p10 }
 0x131   : > { %p864_p13 = pnand %p863_p12, %p857_p9 }
 0x133   : > { %867 = shalt.err (!%p864_p13)
}
 0x134   : > { %s868_s6 = scalar_lea.hbm %s1136_s13, 128  ;;  %s872_s23 = scalar_lea.hbm %s1210_s4, 512 }
 0x135   : > { %p869_p0 = scmp.ne.s32.totalorder %s1136_s13, %s868_s6  ;;  %p873_p3 = scmp.lt.u32.totalorder %s1136_s13, %s1210_s4 }
 0x136   : > { %p874_p4 = scmp.lt.u32.totalorder %s872_s23, %s868_s6  ;;  %p876_p8 = scmp.lt.u32.totalorder %s868_s6, %s1136_s13 }
 0x137   : > { %p870_p1 = pnand %p869_p0, %p992_p5 }
 0x138   : > { %p875_p7 = por %p874_p4, %p873_p3 }
 0x139   : > { %p871_p2 = pneg %p870_p1 }
 0x13a   : > { %p877_p9 = por %p876_p8, %p875_p7 }
 0x13c   : > { %p878_p10 = pnand %p877_p9, %p871_p2 }
 0x13e   : > { %881 = shalt.err (!%p878_p10)
}
 0x13f   : > { %738 = dma.vmem_to_hbm [thread:$0]  (%p992_p5), %s1138_s7, 128, %s1136_s13, %s1140_s14  }
 0x140 PF: > { %p752_p11 = scmp.ge.s32.totalorder %s920_s18, 2  ;;  %s549_s5 = sand.u32 1, %s908_s15  }
 0x141   : > { %s550_s19 = scalar_lea.sflag [#allocation3], %s549_s5 }
 0x142   : > { %p743_p12 = pnand %p752_p11, %p996_p6 }
 0x144   : > { %899 = dma.done.wait (!%p743_p12), %s550_s19, 2048  }
 0x145   : > { %901 = vsyncadd (!%p743_p12), %s550_s19, 4294965248  ;;  %s558_s8 = sand.u32 1, %s657_s20  }
 0x146   : > { %s559_s10 = scalar_lea.sflag [#allocation5], %s558_s8 }
 0x147   : > { %903 = dma.done.wait (!%p743_p12), %s559_s10, 256  }
 0x148   : > { %905 = vsyncadd (!%p743_p12), %s559_s10, 4294967040  ;;  %p18_p5 = scmp.ge.s32.totalorder %s977_s21, 6   ;;  %s1213_s15 = smov %s912_s16 }
 0x149   : > { %s1214_s16 = smov %s916_s17  ;;  %s1215_s17 = smov %s990_s24 }
 0x14a   : > { %s1216_s18 = smov %s977_s21  ;;  %20 = sbr.rel (!%p18_p5) target bundleno = 5 (0x5), region = 95 }
 0x151   :  { %573 = vsyncpa [#allocation3], 1 }
 0x152   :  { %575 = vsyncpa [#allocation3 + $0x1], 1 }
 0x153   :  { %576 = vsyncpa [#allocation5], 1 }
 0x154   :  { %578 = vsyncpa [#allocation5 + $0x1], 1 }

</bundles_post_ra>
